<compile_context>
chip_gen: v6e
topology: v6e:2x2x1
jax: 0.10.0
libtpu: 0.0.40
codegen_flags: <defaults>
</compile_context>

<pallas_src>
import functools

import jax
import jax.numpy as jnp
from jax.experimental import pallas as pl
from jax.experimental.pallas import tpu as pltpu


_LANE = 128
_TB_MAX = 8192          # max batch-tile rows per grid step
_MIN_SPLIT_ROWS = 256   # only force >=2 grid steps (v7x dual-TC) above this batch size


def _round_up(x: int, m: int) -> int:
    return (x + m - 1) // m * m


def _cdiv(a: int, b: int) -> int:
    return (a + b - 1) // b


def _make_gating_kernel(n_layers: int):
    """Kernel for a fixed number of (W, b) layers (after input-layer folding).

    ReLU after every layer except the last; the last layer's (lane-padded) logits are
    softmax-normalized and only the first n_experts columns are stored.
    """

    def kernel(*refs):
        # refs = (x, w0, b0, w1, b1, ..., w_last, b_last, out)
        x_ref = refs[0]
        out_ref = refs[-1]
        params = refs[1:-1]

        z = x_ref[...].astype(params[0].dtype)  # bf16 feed for the MXU
        for li in range(n_layers):
            w = params[2 * li][...]
            b = params[2 * li + 1][...]
            # MXU matmul with f32 accumulation; bias-add / ReLU on the VPU in f32.
            z = jnp.dot(z, w, preferred_element_type=jnp.float32) + b
            if li < n_layers - 1:
                z = jnp.maximum(z, 0.0).astype(w.dtype)

        # Softmax over the (128-lane padded) expert axis.  Padded lanes have zero
        # weight columns and a -1e30 bias, so exp(..) == 0 there and they contribute
        # nothing to the denominator.  Division is exact (matches torch Softmax).
        z = z - jnp.max(z, axis=-1, keepdims=True)
        e = jnp.exp(z)
        p = e / jnp.sum(e, axis=-1, keepdims=True)

        # Store only the real experts (tiny HBM writeback, block dim == full dim).
        out_ref[...] = p[:, : out_ref.shape[-1]].astype(out_ref.dtype)

    return kernel


def init_gating_params(key, n_inputs: int, n_experts: int, depth: int, width: int):
    """PyTorch nn.Linear-style init (uniform +/- 1/sqrt(fan_in)).

    Returns a flat f32 list [w0, b0, w1, b1, ...] with weights stored as
    (in_features, out_features) (so the kernel computes x @ W + b) and biases
    as (1, out_features).
    """
    dims = [(n_inputs, width)] + [(width, width)] * (depth - 1) + [(width, n_experts)]
    params = []
    for fan_in, fan_out in dims:
        key, kw, kb = jax.random.split(key, 3)
        bound = 1.0 / float(fan_in) ** 0.5
        params.append(
            jax.random.uniform(kw, (fan_in, fan_out), jnp.float32, -bound, bound)
        )
        params.append(jax.random.uniform(kb, (1, fan_out), jnp.float32, -bound, bound))
    return params


def prepare_params(params, n_experts: int, param_dtype=jnp.bfloat16):
    """One-time parameter preprocessing (outside the kernel):
      1. fold the activation-free input Linear into the next Linear,
      2. zero-pad every layer's output (and the next layer's input) to a 128-lane
         multiple so all intermediates are lane-dense; the LAST layer's padded
         columns get a -1e30 bias so they softmax to exactly 0,
      3. cast weights to bf16 (kernel accumulates in f32); biases stay f32.
    """
    ws = list(params[0::2])
    bs = list(params[1::2])

    # (1) fold input layer into the following layer (no activation between them).
    w01 = ws[0] @ ws[1]
    b01 = bs[0] @ ws[1] + bs[1]
    ws = [w01] + ws[2:]
    bs = [b01] + bs[2:]
    n_layers = len(ws)

    # (2)+(3) lane padding and dtypes.
    flat = []
    in_dim = ws[0].shape[0]  # n_inputs stays unpadded (matches the x block).
    for li, (w, b) in enumerate(zip(ws, bs)):
        fan_in, fan_out = w.shape
        out_pad = _round_up(max(fan_out, _LANE), _LANE)
        wp = jnp.zeros((in_dim, out_pad), jnp.float32).at[:fan_in, :fan_out].set(w)
        if li == n_layers - 1:
            bp = jnp.full((1, out_pad), -1e30, jnp.float32).at[:, :fan_out].set(b)
        else:
            bp = jnp.zeros((1, out_pad), jnp.float32).at[:, :fan_out].set(b)
        flat.append(wp.astype(param_dtype))
        flat.append(bp.astype(jnp.float32))
        in_dim = out_pad
    return flat


@functools.partial(jax.jit, static_argnames=("n_experts",))
def gating_forward(x, prepared_params, *, n_experts: int):
    """x: (batch, n_inputs) -> softmax gate probabilities (batch, n_experts), f32."""
    batch, n_inputs = x.shape
    n_layers = len(prepared_params) // 2

    # bf16 activations halve the dominant HBM read stream; compute accumulates in f32.
    x = x.astype(jnp.bfloat16)

    # Balanced batch tiling: minimal padding waste, large tiles to amortize the
    # per-grid-step overhead, and an even number of >=2 steps for large batches so
    # v7x's two TensorCores both get work.
    num_tiles = max(_cdiv(batch, _TB_MAX), 1)
    if batch >= 2 * _MIN_SPLIT_ROWS:
        num_tiles = max(num_tiles, 2)
    if num_tiles > 1 and num_tiles % 2 == 1:
        num_tiles += 1
    tb = _round_up(_cdiv(batch, num_tiles), 8)
    padded_batch = num_tiles * tb
    if padded_batch != batch:
        x = jnp.pad(x, ((0, padded_batch - batch), (0, 0)))

    # Weights/biases: full blocks, constant index_map -> VMEM-resident across steps.
    weight_specs = [pl.BlockSpec(p.shape, lambda i: (0, 0)) for p in prepared_params]

    out = pl.pallas_call(
        _make_gating_kernel(n_layers),
        out_shape=jax.ShapeDtypeStruct((padded_batch, n_experts), jnp.float32),
        grid=(num_tiles,),
        in_specs=[pl.BlockSpec((tb, n_inputs), lambda i: (i, 0))] + weight_specs,
        out_specs=pl.BlockSpec((tb, n_experts), lambda i: (i, 0)),
        compiler_params=pltpu.CompilerParams(
            dimension_semantics=("parallel",),  # shard batch tiles across TCs on v7x
        ),
    )(x, *prepared_params)

    return out[:batch]


def _reference_prepared(x, prepared, n_experts):
    """Pure-JAX reference over the *prepared* (folded / padded / bf16) params."""
    n_layers = len(prepared) // 2
    z = x.astype(jnp.bfloat16).astype(prepared[0].dtype)
    for li in range(n_layers):
        w, b = prepared[2 * li], prepared[2 * li + 1]
        z = jnp.dot(z, w, preferred_element_type=jnp.float32) + b
        if li < n_layers - 1:
            z = jnp.maximum(z, 0.0).astype(w.dtype)
    z = z - jnp.max(z, axis=-1, keepdims=True)
    e = jnp.exp(z)
    p = e / jnp.sum(e, axis=-1, keepdims=True)
    return p[:, :n_experts]


def _reference_module(x, params_f32, depth):
    """Pure-JAX f32 reference of the original PyTorch module (unfolded, unpadded)."""
    z = x.astype(jnp.float32) @ params_f32[0] + params_f32[1]
    idx = 2
    for _ in range(depth - 1):
        z = jnp.maximum(z @ params_f32[idx] + params_f32[idx + 1], 0.0)
        idx += 2
    z = z @ params_f32[idx] + params_f32[idx + 1]
    z = z - jnp.max(z, axis=1, keepdims=True)
    e = jnp.exp(z)
    return e / jnp.sum(e, axis=1, keepdims=True)


if __name__ == "__main__":
    # Small shapes consistent with the module: x is (batch, n_inputs).
    batch, n_inputs, n_experts, depth, width = 8, 32, 4, 3, 32

    key = jax.random.PRNGKey(0)
    key_x, key_p = jax.random.split(key)
    x = jax.random.normal(key_x, (batch, n_inputs), dtype=jnp.float32)

    params_f32 = init_gating_params(key_p, n_inputs, n_experts, depth, width)
    prepared = prepare_params(params_f32, n_experts)

    p = gating_forward(x, prepared, n_experts=n_experts)
    jax.block_until_ready(p)

    assert p.shape == (batch, n_experts)

    # Kernel-exactness check: same prepared params, pure-JAX math.
    p_ref = _reference_prepared(x, prepared, n_experts)
    assert jnp.allclose(p, p_ref, atol=5e-3, rtol=1e-2), float(jnp.max(jnp.abs(p - p_ref)))

    # Semantics check against the original (unfolded, f32) module definition;
    # looser tolerance only because the fast path stores weights/activations in bf16.
    p_mod = _reference_module(x, params_f32, depth)
    assert jnp.allclose(p, p_mod, atol=5e-2), float(jnp.max(jnp.abs(p - p_mod)))

    # Probabilities sum to 1 (exact division in f32).
    assert jnp.allclose(jnp.sum(p, axis=1), 1.0, atol=1e-3)

    print("KERNEL_OK")
</pallas_src>

<mosaic_0001>
module attributes {stable_mosaic.version = 11 : i64} {
  func.func @kernel(%arg0: i32, %arg1: memref<8x32xbf16, #tpu.memory_space<vmem>>, %arg2: memref<32x128xbf16, #tpu.memory_space<vmem>>, %arg3: memref<1x128xf32, #tpu.memory_space<vmem>>, %arg4: memref<128x128xbf16, #tpu.memory_space<vmem>>, %arg5: memref<1x128xf32, #tpu.memory_space<vmem>>, %arg6: memref<128x128xbf16, #tpu.memory_space<vmem>>, %arg7: memref<1x128xf32, #tpu.memory_space<vmem>>, %arg8: memref<8x4xf32, #tpu.memory_space<vmem>>) attributes {dimension_semantics = [#tpu.dimension_semantics<parallel>], iteration_bounds = array<i64: 1>, scalar_prefetch = 0 : i64, scratch_operands = 0 : i64, tpu.core_type = #tpu.core_type<tc>, window_params = [{transform_indices = @transform_0, window_bounds = array<i64: 8, 32>}, {pipeline_mode = #tpu.pipeline_mode<synchronous>, transform_indices = @transform_1, window_bounds = array<i64: 32, 128>}, {pipeline_mode = #tpu.pipeline_mode<synchronous>, transform_indices = @transform_2, window_bounds = array<i64: 1, 128>}, {pipeline_mode = #tpu.pipeline_mode<synchronous>, transform_indices = @transform_3, window_bounds = array<i64: 128, 128>}, {pipeline_mode = #tpu.pipeline_mode<synchronous>, transform_indices = @transform_4, window_bounds = array<i64: 1, 128>}, {pipeline_mode = #tpu.pipeline_mode<synchronous>, transform_indices = @transform_5, window_bounds = array<i64: 128, 128>}, {pipeline_mode = #tpu.pipeline_mode<synchronous>, transform_indices = @transform_6, window_bounds = array<i64: 1, 128>}, {transform_indices = @transform_7, window_bounds = array<i64: 8, 4>}]} {
    %c0 = arith.constant 0 : index
    %c0_0 = arith.constant 0 : index
    %0 = vector.load %arg1[%c0, %c0_0] : memref<8x32xbf16, #tpu.memory_space<vmem>>, vector<8x32xbf16>
    %c0_1 = arith.constant 0 : index
    %c0_2 = arith.constant 0 : index
    %1 = vector.load %arg2[%c0_1, %c0_2] : memref<32x128xbf16, #tpu.memory_space<vmem>>, vector<32x128xbf16>
    %c0_3 = arith.constant 0 : index
    %c0_4 = arith.constant 0 : index
    %2 = vector.load %arg3[%c0_3, %c0_4] : memref<1x128xf32, #tpu.memory_space<vmem>>, vector<1x128xf32>
    %cst = arith.constant dense<0.000000e+00> : vector<8x128xf32>
    %3 = tpu.matmul %0, %1, %cst {dimension_numbers = #tpu.dot_dimension_numbers<[1], [0], [0], [1], [0, 0, 1, 1], [], []>} : vector<8x32xbf16>, vector<32x128xbf16>, vector<8x128xf32> -> vector<8x128xf32>
    %4 = vector.broadcast %2 : vector<1x128xf32> to vector<8x128xf32>
    %5 = arith.addf %3, %4 : vector<8x128xf32>
    %cst_5 = arith.constant 0.000000e+00 : f32
    %6 = vector.broadcast %cst_5 : f32 to vector<8x128xf32>
    %7 = arith.maximumf %5, %6 : vector<8x128xf32>
    %8 = arith.truncf %7 : vector<8x128xf32> to vector<8x128xbf16>
    %c0_6 = arith.constant 0 : index
    %c0_7 = arith.constant 0 : index
    %9 = vector.load %arg4[%c0_6, %c0_7] : memref<128x128xbf16, #tpu.memory_space<vmem>>, vector<128x128xbf16>
    %c0_8 = arith.constant 0 : index
    %c0_9 = arith.constant 0 : index
    %10 = vector.load %arg5[%c0_8, %c0_9] : memref<1x128xf32, #tpu.memory_space<vmem>>, vector<1x128xf32>
    %cst_10 = arith.constant dense<0.000000e+00> : vector<8x128xf32>
    %11 = tpu.matmul %8, %9, %cst_10 {dimension_numbers = #tpu.dot_dimension_numbers<[1], [0], [0], [1], [0, 0, 1, 1], [], []>} : vector<8x128xbf16>, vector<128x128xbf16>, vector<8x128xf32> -> vector<8x128xf32>
    %12 = vector.broadcast %10 : vector<1x128xf32> to vector<8x128xf32>
    %13 = arith.addf %11, %12 : vector<8x128xf32>
    %cst_11 = arith.constant 0.000000e+00 : f32
    %14 = vector.broadcast %cst_11 : f32 to vector<8x128xf32>
    %15 = arith.maximumf %13, %14 : vector<8x128xf32>
    %16 = arith.truncf %15 : vector<8x128xf32> to vector<8x128xbf16>
    %c0_12 = arith.constant 0 : index
    %c0_13 = arith.constant 0 : index
    %17 = vector.load %arg6[%c0_12, %c0_13] : memref<128x128xbf16, #tpu.memory_space<vmem>>, vector<128x128xbf16>
    %c0_14 = arith.constant 0 : index
    %c0_15 = arith.constant 0 : index
    %18 = vector.load %arg7[%c0_14, %c0_15] : memref<1x128xf32, #tpu.memory_space<vmem>>, vector<1x128xf32>
    %cst_16 = arith.constant dense<0.000000e+00> : vector<8x128xf32>
    %19 = tpu.matmul %16, %17, %cst_16 {dimension_numbers = #tpu.dot_dimension_numbers<[1], [0], [0], [1], [0, 0, 1, 1], [], []>} : vector<8x128xbf16>, vector<128x128xbf16>, vector<8x128xf32> -> vector<8x128xf32>
    %20 = vector.broadcast %18 : vector<1x128xf32> to vector<8x128xf32>
    %21 = arith.addf %19, %20 : vector<8x128xf32>
    %cst_17 = arith.constant dense<0xFF800000> : vector<8xf32>
    %22 = vector.multi_reduction <maximumf>, %21, %cst_17 [1] : vector<8x128xf32> to vector<8xf32>
    %23 = vector.shape_cast %22 : vector<8xf32> to vector<8x1xf32>
    %24 = vector.broadcast %23 : vector<8x1xf32> to vector<8x128xf32>
    %25 = arith.subf %21, %24 : vector<8x128xf32>
    %26 = math.exp %25 : vector<8x128xf32>
    %cst_18 = arith.constant dense<0.000000e+00> : vector<8xf32>
    %27 = vector.multi_reduction <add>, %26, %cst_18 [1] : vector<8x128xf32> to vector<8xf32>
    %28 = vector.shape_cast %27 : vector<8xf32> to vector<8x1xf32>
    %29 = vector.broadcast %28 : vector<8x1xf32> to vector<8x128xf32>
    %30 = arith.divf %26, %29 : vector<8x128xf32>
    %31 = vector.extract_strided_slice %30 {offsets = [0, 0], sizes = [8, 4], strides = [1, 1]} : vector<8x128xf32> to vector<8x4xf32>
    %c0_19 = arith.constant 0 : index
    %c0_20 = arith.constant 0 : index
    %32 = vector.load %arg8[%c0_19, %c0_20] : memref<8x4xf32, #tpu.memory_space<vmem>>, vector<8x4xf32>
    tpu.vector_store %arg8[%c0_19, %c0_20], %31 {strides = array<i32>} : memref<8x4xf32, #tpu.memory_space<vmem>>, vector<8x4xf32>,
    return
  }
  func.func @transform_0(%arg0: i32) -> (i32, i32) {
    %c0_i32 = arith.constant 0 : i32
    %c0_i32_0 = arith.constant 0 : i32
    return %arg0, %c0_i32 : i32, i32
  }
  func.func @transform_1(%arg0: i32) -> (i32, i32) {
    %c0_i32 = arith.constant 0 : i32
    %c0_i32_0 = arith.constant 0 : i32
    %c0_i32_1 = arith.constant 0 : i32
    return %c0_i32, %c0_i32_0 : i32, i32
  }
  func.func @transform_2(%arg0: i32) -> (i32, i32) {
    %c0_i32 = arith.constant 0 : i32
    %c0_i32_0 = arith.constant 0 : i32
    %c0_i32_1 = arith.constant 0 : i32
    return %c0_i32, %c0_i32_0 : i32, i32
  }
  func.func @transform_3(%arg0: i32) -> (i32, i32) {
    %c0_i32 = arith.constant 0 : i32
    %c0_i32_0 = arith.constant 0 : i32
    %c0_i32_1 = arith.constant 0 : i32
    return %c0_i32, %c0_i32_0 : i32, i32
  }
  func.func @transform_4(%arg0: i32) -> (i32, i32) {
    %c0_i32 = arith.constant 0 : i32
    %c0_i32_0 = arith.constant 0 : i32
    %c0_i32_1 = arith.constant 0 : i32
    return %c0_i32, %c0_i32_0 : i32, i32
  }
  func.func @transform_5(%arg0: i32) -> (i32, i32) {
    %c0_i32 = arith.constant 0 : i32
    %c0_i32_0 = arith.constant 0 : i32
    %c0_i32_1 = arith.constant 0 : i32
    return %c0_i32, %c0_i32_0 : i32, i32
  }
  func.func @transform_6(%arg0: i32) -> (i32, i32) {
    %c0_i32 = arith.constant 0 : i32
    %c0_i32_0 = arith.constant 0 : i32
    %c0_i32_1 = arith.constant 0 : i32
    return %c0_i32, %c0_i32_0 : i32, i32
  }
  func.func @transform_7(%arg0: i32) -> (i32, i32) {
    %c0_i32 = arith.constant 0 : i32
    %c0_i32_0 = arith.constant 0 : i32
    return %arg0, %c0_i32 : i32, i32
  }
}

</mosaic_0001>

<bundles_post_ra>
// kernel: gating_forward.1
= control target key start
LH: loop header
LB: loop body
LE: loop exit
PB: predicated region body
PF: predicated region fallthrough
CT: control target
= control target key end

     0   :  { %12 = vsyncpa [#allocation3], 0  ;;  %s658_s0 = inlined_call_operand.vmem [shape: bf16[8,32], index: 0, kind: input, shape index: {}]   ;;  %s659_s1 = inlined_call_operand.hbm [shape: bf16[32,128], index: 1, kind: input, shape index: {}]   ;;  %s660_s2 = inlined_call_operand.vmem [shape: f32[1,128], index: 2, kind: input, shape index: {}]   ;;  %s661_s3 = inlined_call_operand.hbm [shape: bf16[128,128], index: 3, kind: input, shape index: {}]   ;;  %s662_s4 = inlined_call_operand.vmem [shape: f32[1,128], index: 4, kind: input, shape index: {}]   ;;  %s663_s5 = inlined_call_operand.hbm [shape: bf16[128,128], index: 5, kind: input, shape index: {}]   ;;  %s664_s6 = inlined_call_operand.vmem [shape: f32[1,128], index: 6, kind: input, shape index: {}]   ;;  %s665_s7 = inlined_call_operand.vmem [shape: f32[8,4], index: 7, kind: output, shape index: {}]  }
   0x1   :  { %13 = vsyncpa [#allocation5], 0  ;;  %s563_s24 = smov [#allocation4]   ;;  %s564_s26 = smov [#allocation2]  }
   0x2   :  { %s35_s25 = sshll.u32 %s563_s24, 4  ;;  %s21_s27 = sshll.u32 %s564_s26, 4  ;;  %s36_s25 = int_to_ptr.vmem [resolvable:$true] %s35_s25  ;;  %s22_s27 = int_to_ptr.vmem [resolvable:$true] %s21_s27 }
   0x3   :  { %s507_s28 = scalar_lea.vmem %s36_s25, 1024  ;;  %p512_p1 = scmp.lt.s32.totalorder %s36_s25, %s36_s25 }
   0x4   :  { %p508_p0 = scmp.ne.s32.totalorder %s36_s25, %s507_s28  ;;  %p513_p2 = scmp.lt.s32.totalorder %s507_s28, %s507_s28 }
   0x6   :  { %p514_p3 = por %p513_p2, %p512_p1 }
   0x8   :  { %p515_p4 = pnand %p514_p3, %p508_p0 }
   0xa   :  { %518 = shalt.err (!%p515_p4)
}
   0xb   :  { %s565_s29 = smov 64   ;;  %s566_s30 = smov 4  }
   0xc   :  { %41 = dma.hbm_to_vmem [thread:$0]  %s661_s3, 1024, %s36_s25, [#allocation5], %s565_s29, %s565_s29, %s566_s30  }
   0xd   :  { %s527_s10 = scalar_lea.vmem %s22_s27, 256  ;;  %p532_p6 = scmp.lt.s32.totalorder %s22_s27, %s22_s27 }
   0xe   :  { %p528_p5 = scmp.ne.s32.totalorder %s22_s27, %s527_s10  ;;  %p533_p7 = scmp.lt.s32.totalorder %s527_s10, %s527_s10 }
  0x10   :  { %p534_p8 = por %p533_p7, %p532_p6 }
  0x12   :  { %p535_p9 = pnand %p534_p8, %p528_p5 }
  0x14   :  { %538 = shalt.err (!%p535_p9)
}
  0x15   :  { %27 = dma.hbm_to_vmem [thread:$0]  %s659_s1, 256, %s22_s27, [#allocation3], %s565_s29, %s565_s29, %s566_s30  }
  0x16   :  { %s567_s13 = smov [#allocation6]  }
  0x17   :  { %s49_s14 = sshll.u32 %s567_s13, 4  ;;  %s50_s14 = int_to_ptr.vmem [resolvable:$true] %s49_s14 }
  0x18   :  { %s547_s15 = scalar_lea.vmem %s50_s14, 1024  ;;  %p552_p11 = scmp.lt.s32.totalorder %s50_s14, %s50_s14 }
  0x19   :  { %p548_p10 = scmp.ne.s32.totalorder %s50_s14, %s547_s15  ;;  %p553_p12 = scmp.lt.s32.totalorder %s547_s15, %s547_s15 }
  0x1b   :  { %p554_p13 = por %p553_p12, %p552_p11 }
  0x1d   :  { %p555_p0 = pnand %p554_p13, %p548_p10 }
  0x1f   :  { %558 = shalt.err (!%p555_p0)
}
  0x20   :  { %55 = dma.hbm_to_vmem [thread:$0]  %s663_s5, 1024, %s50_s14, [#allocation5], %s565_s29, %s565_s29, %s566_s30  }
  0x21   :  { %559 = dma.done.wait [#allocation3], 256  }
  0x22   :  { %560 = vsyncadd [#allocation3], 4294967040 }
  0x23   :  { %561 = dma.done.wait [#allocation5], 2048  }
  0x24   :  { %562 = vsyncadd [#allocation5], 4294965248  ;;  %v568_v0 = vmov 0.0   ;;  %vm569_vm0 = vmmov 0   ;;  %v477_v1 = vld [vmem:[#allocation2 + $0x8] sm:$0xff]   ;;  %v478_v2 = vld [vmem:[#allocation2] sm:$0xff]  }
  0x25   :  { %422 = vmatprep.subr.bf16.mxu0 %v568_v0  ;;  %426 = vmatprep.mubr.msk.bf16.mxu0 %vm569_vm0, %v568_v0  ;;  %v479_v3 = vld [vmem:[#allocation4 + $0x38] sm:$0xff]   ;;  %vm92_vm1 = vcmask 261120   ;;  %v480_v4 = vld [vmem:[#allocation4 + $0x30] sm:$0xff]   ;;  %v481_v6 = vld [vmem:[#allocation4 + $0x28] sm:$0xff]   ;;  %vm371_vm2 = vcmask 31744  }
  0x26   :  { %430 = vmatprep.subr.bf16.mxu1 %v568_v0  ;;  %446 = vmatprep.mubr.msk.bf16.mxu1 %vm569_vm0, %v568_v0  ;;  %v68_v5 = vld [vmem:[%s658_s0] sm:$0xf]  ;;  %v482_v7 = vld [vmem:[#allocation4 + $0x20] sm:$0xff]   ;;  %v483_v8 = vld [vmem:[#allocation4 + $0x18] sm:$0xff]  }
  0x27   :  { %423 = vmatpush3.bf16.msra.mxu0 %v477_v1  ;;  %431 = vmatpush3.bf16.msra.mxu1 %v479_v3  ;;  %v484_v9 = vld [vmem:[#allocation4 + $0x10] sm:$0xff]   ;;  %v485_v10 = vld [vmem:[#allocation4 + $0x8] sm:$0xff]   ;;  %v486_v11 = vld [vmem:[#allocation4] sm:$0xff]  }
  0x28   :  { %424 = vmatprep.subr.bf16.mxu0 %v568_v0  ;;  %432 = vmatprep.subr.bf16.mxu1 %v568_v0  ;;  %v487_v12 = vld [vmem:[#allocation6 + $0x38] sm:$0xff]   ;;  %v488_v13 = vld [vmem:[#allocation6 + $0x30] sm:$0xff]   ;;  %v489_v14 = vld [vmem:[#allocation6 + $0x28] sm:$0xff]  }
  0x29   :  { %v490_v15 = vld [vmem:[#allocation6 + $0x20] sm:$0xff]   ;;  %v491_v16 = vld [vmem:[#allocation6 + $0x18] sm:$0xff]   ;;  %v492_v17 = vld [vmem:[#allocation6 + $0x10] sm:$0xff]  }
  0x2a   :  { %v379_v18 = vld [vmem:[%s660_s2] ss:$0 sm:$0xff]  ;;  %v493_v26 = vld [vmem:[#allocation6 + $0x8] sm:$0xff]   ;;  %v494_v27 = vld [vmem:[#allocation6] sm:$0xff]  }
  0x2b   :  { %425 = vmatpush3.bf16.msra.mxu0 %v478_v2  ;;  %433 = vmatpush3.bf16.msra.mxu1 %v480_v4  ;;  %v383_v28 = vld [vmem:[%s662_s4] ss:$0 sm:$0xff] }
  0x2c   :  { %450 = vmatprep.subr.bf16.mxu0 %v568_v0  ;;  %434 = vmatprep.subr.bf16.mxu1 %v568_v0  ;;  %v392_v36 = vld [vmem:[%s664_s6] ss:$0 sm:$0xff] }
  0x2e   :  { %427 = vmatmul.mubr.msk.bf16.vlgmr.msra.gmra.mxu0 %vm92_vm1, %v68_v5 }
  0x2f   :  { %466 = vmatprep.mubr.msk.bf16.mxu0 %vm569_vm0, %v568_v0  ;;  %435 = vmatpush3.bf16.msra.mxu1 %v481_v6 }
  0x30   :  { %436 = vmatprep.subr.bf16.mxu1 %v568_v0  ;;  %451 = vmatpush3.bf16.msra.mxu0 %v487_v12 }
  0x31   :  { %452 = vmatprep.subr.bf16.mxu0 %v568_v0 }
  0x33   :  { %437 = vmatpush3.bf16.msra.mxu1 %v482_v7 }
  0x34   :  { %438 = vmatprep.subr.bf16.mxu1 %v568_v0  ;;  %453 = vmatpush3.bf16.msra.mxu0 %v488_v13 }
  0x35   :  { %454 = vmatprep.subr.bf16.mxu0 %v568_v0 }
  0x37   :  { %439 = vmatpush3.bf16.msra.mxu1 %v483_v8 }
  0x38   :  { %440 = vmatprep.subr.bf16.mxu1 %v568_v0  ;;  %455 = vmatpush3.bf16.msra.mxu0 %v489_v14 }
  0x39   :  { %456 = vmatprep.subr.bf16.mxu0 %v568_v0 }
  0x3b   :  { %441 = vmatpush3.bf16.msra.mxu1 %v484_v9 }
  0x3c   :  { %442 = vmatprep.subr.bf16.mxu1 %v568_v0  ;;  %457 = vmatpush3.bf16.msra.mxu0 %v490_v15 }
  0x3d   :  { %458 = vmatprep.subr.bf16.mxu0 %v568_v0 }
  0x3f   :  { %443 = vmatpush3.bf16.msra.mxu1 %v485_v10 }
  0x40   :  { %444 = vmatprep.subr.bf16.mxu1 %v568_v0  ;;  %459 = vmatpush3.bf16.msra.mxu0 %v491_v16 }
  0x41   :  { %460 = vmatprep.subr.bf16.mxu0 %v568_v0 }
  0x43   :  { %445 = vmatpush3.bf16.msra.mxu1 %v486_v11 }
  0x44   :  { %461 = vmatpush3.bf16.msra.mxu0 %v492_v17 }
  0x45   :  { %462 = vmatprep.subr.bf16.mxu0 %v568_v0 }
  0x48   :  { %463 = vmatpush3.bf16.msra.mxu0 %v493_v26 }
  0x49   :  { %464 = vmatprep.subr.bf16.mxu0 %v568_v0 }
  0x4c   :  { %465 = vmatpush3.bf16.msra.mxu0 %v494_v27 }
  0xee   :  { %v130_v19 = vpop.f32.mrf.mxu0 }
  0xef   :  { %v131_v20 = vadd.f32 %v379_v18, %v130_v19 }
  0xf0   :  { %v428_v21 = vpop.f32.mrf.mxu0 }
  0xf1   :  { %v136_v22 = vmax.f32 %v131_v20, 0.0 }
  0xf2   :  { %v133_v23 = vpop.f32.mrf.mxu0 }
  0xf3   :  { %v137_v24 = vpack.c.bf16 %v136_v22, %v136_v22 }
  0xf4   :  { %v429_v25 = vpop.f32.mrf.mxu0 }
  0xf5   :  { %447 = vmatmul.mubr.bf16.vlgmr.msra.gmra.mxu1 %v137_v24 }
 0x1b5   :  { %v243_v29 = vpop.f32.mrf.mxu1 }
 0x1b6   :  { %v244_v30 = vadd.f32 %v383_v28, %v243_v29 }
 0x1b7   :  { %v448_v31 = vpop.f32.mrf.mxu1 }
 0x1b8   :  { %v249_v32 = vmax.f32 %v244_v30, 0.0 }
 0x1b9   :  { %v246_v33 = vpop.f32.mrf.mxu1 }
 0x1ba   :  { %v250_v34 = vpack.c.bf16 %v249_v32, %v249_v32 }
 0x1bb   :  { %v449_v35 = vpop.f32.mrf.mxu1 }
 0x1bc   :  { %467 = vmatmul.mubr.bf16.vlgmr.msra.gmra.mxu0 %v250_v34 }
 0x27c   :  { %v356_v37 = vpop.f32.mrf.mxu0 }
 0x27d   :  { %v357_v38 = vadd.f32 %v392_v36, %v356_v37 }
 0x27e   :  { %v468_v39 = vpop.f32.mrf.mxu0 }
 0x27f   :  { %362 = vmax.xlane.f32.xlu0 %v357_v38 }
 0x280   :  { %v359_v40 = vpop.f32.mrf.mxu0 }
 0x282   :  { %v469_v41 = vpop.f32.mrf.mxu0 }
 0x308   :  { %v363_v42 = vpop.xlane.xlu0 %362 }
 0x309   :  { %v364_v43 = vsub.f32 %v357_v38, %v363_v42 }
 0x30b   :  { %v365_v44 = vmul.f32 1.442695, %v364_v43 }
 0x30d   :  { %495 = vpow2.f32 %v365_v44 }
 0x31a   :  { %v496_v45 = vpop.eup %495 }
 0x31b   :  { %367 = vadd.xlane.f32.xlu0 %v496_v45 }
 0x3a4   :  { %v368_v46 = vpop.xlane.xlu0 %367 }
 0x3a5   :  { %497 = vrcp.f32 %v368_v46 }
 0x3b2   :  { %v498_v47 = vpop.eup %497 }
 0x3b3   :  { %v370_v48 = vmul.f32 %v498_v47, %v496_v45 }
 0x3b5   :  { %372 = vst.msk [vmem:[%s665_s7] sm:$0xff] %vm371_vm2, %v370_v48 }
 0x3b6   :  { %377 = vsyncpa [#allocation3], 1 }
 0x3b7   :  { %378 = vsyncpa [#allocation5], 1 }

</bundles_post_ra>
